<compile_context>
chip_gen: v7x
topology: tpu7x:2x2x1
jax: 0.10.0
libtpu: 0.0.40
codegen_flags: <defaults>
</compile_context>

<pallas_src>
import jax
import jax.numpy as jnp
from jax.experimental import pallas as pl
from jax.experimental.pallas import tpu as pltpu


def _linear_kernel(w_ref, b_ref, x_ref, o_ref):
    """VPU-only linear layer on a transposed tile.

    w_ref: SMEM [F_out, F_in]  (PyTorch nn.Linear layout, read as scalars)
    b_ref: SMEM [F_out]
    x_ref: VMEM [F_in,  TB]    (features on sublanes, batch on lanes)
    o_ref: VMEM [F_out, TB]
    """
    f_in = x_ref.shape[0]
    f_out = o_ref.shape[0]

    # Load each feature row once ([1, TB] keeps 2-D, full-lane-width vectors).
    xs = [x_ref[k:k + 1, :] for k in range(f_in)]

    # Fully unrolled: f_out * f_in scalar-broadcast FMAs on the VPU.
    for j in range(f_out):
        acc = xs[0] * w_ref[j, 0] + b_ref[j]
        for k in range(1, f_in):
            acc = acc + xs[k] * w_ref[j, k]
        o_ref[j:j + 1, :] = acc.astype(o_ref.dtype)


def _pallas_linear_t(weight, bias, x_t, *, block_b):
    """Compute y_t = (x_t^T @ W^T + b)^T with x_t, y_t in [features, batch] layout."""
    f_in, batch = x_t.shape
    f_out = weight.shape[0]
    smem_spec = pl.BlockSpec(memory_space=pltpu.MemorySpace.SMEM)
    vmem_spec = pl.BlockSpec(memory_space=pltpu.MemorySpace.VMEM)

    if batch <= block_b:
        # Tiny batch: single whole-array call, no grid machinery / per-step overhead.
        return pl.pallas_call(
            _linear_kernel,
            out_shape=jax.ShapeDtypeStruct((f_out, batch), x_t.dtype),
            in_specs=[smem_spec, smem_spec, vmem_spec],
            out_specs=vmem_spec,
        )(weight, bias, x_t)

    # Large batch: tile the lane (batch) axis. block_b is a multiple of 128 so
    # every tile is lane-dense; pad the tail and slice it off afterwards.
    # VMEM per step is only ~f_in*block_b*4B * 2 buffers (a few KiB), far under
    # even v7x's 64 MiB, so no vmem_limit_bytes override is needed.
    pad = (-batch) % block_b
    if pad:
        x_t = jnp.pad(x_t, ((0, 0), (0, pad)))
    batch_p = batch + pad

    y_t = pl.pallas_call(
        _linear_kernel,
        out_shape=jax.ShapeDtypeStruct((f_out, batch_p), x_t.dtype),
        grid=(batch_p // block_b,),
        in_specs=[
            smem_spec,                                        # weight (whole, SMEM)
            smem_spec,                                        # bias   (whole, SMEM)
            pl.BlockSpec((f_in, block_b), lambda i: (0, i)),  # x_t batch tile
        ],
        out_specs=pl.BlockSpec((f_out, block_b), lambda i: (0, i)),
        compiler_params=pltpu.CompilerParams(
            dimension_semantics=("parallel",),  # batch tiles are independent
        ),
    )(weight, bias, x_t)
    return y_t[:, :batch]


def air_quality_model_forward(x, weight, bias, *, block_b=512):
    """Drop-in forward for AirQualityModel.

    x:      [B, 3] float32
    weight: [3, 3] float32  (PyTorch nn.Linear layout: [out_features, in_features])
    bias:   [3]    float32
    returns [B, 3] float32 == x @ weight.T + bias

    The [B, F] <-> [F, B] transposes live in the wrapper only; in a production
    pipeline you would keep the batch-on-lanes layout end-to-end.
    """
    y_t = _pallas_linear_t(weight, bias, x.T, block_b=block_b)
    return y_t.T


if __name__ == "__main__":
    key = jax.random.PRNGKey(0)
    kx, kw, kb, kx2 = jax.random.split(key, 4)

    F = 3  # nn.Linear(3, 3)

    # Deterministic parameter init mimicking PyTorch's Linear default
    # (uniform in [-1/sqrt(fan_in), 1/sqrt(fan_in)]).
    bound = 1.0 / jnp.sqrt(jnp.float32(F))
    weight = jax.random.uniform(kw, (F, F), jnp.float32, -bound, bound)
    bias = jax.random.uniform(kb, (F,), jnp.float32, -bound, bound)

    # --- Small batch: exercises the grid-less whole-array path -------------
    B = 8
    x = jax.random.normal(kx, (B, F), jnp.float32)
    y = jax.block_until_ready(air_quality_model_forward(x, weight, bias))
    y_ref = x @ weight.T + bias
    assert y.shape == (B, F)
    assert jnp.allclose(y, y_ref, atol=1e-5, rtol=1e-5)

    # --- Larger batch: exercises the tiled "parallel" grid path ------------
    B2 = 600  # pads to 768 = 3 tiles of 256 lanes
    x2 = jax.random.normal(kx2, (B2, F), jnp.float32)
    y2 = jax.block_until_ready(
        air_quality_model_forward(x2, weight, bias, block_b=256))
    y2_ref = x2 @ weight.T + bias
    assert y2.shape == (B2, F)
    assert jnp.allclose(y2, y2_ref, atol=1e-5, rtol=1e-5)

    print("KERNEL_OK")
</pallas_src>

<mosaic_0001>
module attributes {stable_mosaic.version = 11 : i64} {
  func.func @_linear_kernel(%arg0: memref<3x3xf32, #tpu.memory_space<smem>>, %arg1: memref<3xf32, #tpu.memory_space<smem>>, %arg2: memref<3x8xf32, #tpu.memory_space<vmem>>, %arg3: memref<3x8xf32, #tpu.memory_space<vmem>>) attributes {dimension_semantics = [], scalar_prefetch = 0 : i64, scratch_operands = 0 : i64, tpu.core_type = #tpu.core_type<tc>} {
    %c0 = arith.constant 0 : index
    %c0_0 = arith.constant 0 : index
    %0 = vector.load %arg2[%c0, %c0_0] : memref<3x8xf32, #tpu.memory_space<vmem>>, vector<1x8xf32>
    %c1 = arith.constant 1 : index
    %c0_1 = arith.constant 0 : index
    %1 = vector.load %arg2[%c1, %c0_1] : memref<3x8xf32, #tpu.memory_space<vmem>>, vector<1x8xf32>
    %c2 = arith.constant 2 : index
    %c0_2 = arith.constant 0 : index
    %2 = vector.load %arg2[%c2, %c0_2] : memref<3x8xf32, #tpu.memory_space<vmem>>, vector<1x8xf32>
    %c0_3 = arith.constant 0 : index
    %c0_4 = arith.constant 0 : index
    %3 = memref.load %arg0[%c0_3, %c0_4] : memref<3x3xf32, #tpu.memory_space<smem>>
    %4 = vector.broadcast %3 : f32 to vector<1x8xf32>
    %5 = arith.mulf %0, %4 : vector<1x8xf32>
    %c0_5 = arith.constant 0 : index
    %6 = memref.load %arg1[%c0_5] : memref<3xf32, #tpu.memory_space<smem>>
    %7 = vector.broadcast %6 : f32 to vector<1x8xf32>
    %8 = arith.addf %5, %7 : vector<1x8xf32>
    %c0_6 = arith.constant 0 : index
    %c1_7 = arith.constant 1 : index
    %9 = memref.load %arg0[%c0_6, %c1_7] : memref<3x3xf32, #tpu.memory_space<smem>>
    %10 = vector.broadcast %9 : f32 to vector<1x8xf32>
    %11 = arith.mulf %1, %10 : vector<1x8xf32>
    %12 = arith.addf %8, %11 : vector<1x8xf32>
    %c0_8 = arith.constant 0 : index
    %c2_9 = arith.constant 2 : index
    %13 = memref.load %arg0[%c0_8, %c2_9] : memref<3x3xf32, #tpu.memory_space<smem>>
    %14 = vector.broadcast %13 : f32 to vector<1x8xf32>
    %15 = arith.mulf %2, %14 : vector<1x8xf32>
    %16 = arith.addf %12, %15 : vector<1x8xf32>
    %c0_10 = arith.constant 0 : index
    %c0_11 = arith.constant 0 : index
    %17 = vector.load %arg3[%c0_10, %c0_11] : memref<3x8xf32, #tpu.memory_space<vmem>>, vector<1x8xf32>
    tpu.vector_store %arg3[%c0_10, %c0_11], %16 {strides = array<i32>} : memref<3x8xf32, #tpu.memory_space<vmem>>, vector<1x8xf32>,
    %c1_12 = arith.constant 1 : index
    %c0_13 = arith.constant 0 : index
    %18 = memref.load %arg0[%c1_12, %c0_13] : memref<3x3xf32, #tpu.memory_space<smem>>
    %19 = vector.broadcast %18 : f32 to vector<1x8xf32>
    %20 = arith.mulf %0, %19 : vector<1x8xf32>
    %c1_14 = arith.constant 1 : index
    %21 = memref.load %arg1[%c1_14] : memref<3xf32, #tpu.memory_space<smem>>
    %22 = vector.broadcast %21 : f32 to vector<1x8xf32>
    %23 = arith.addf %20, %22 : vector<1x8xf32>
    %c1_15 = arith.constant 1 : index
    %c1_16 = arith.constant 1 : index
    %24 = memref.load %arg0[%c1_15, %c1_16] : memref<3x3xf32, #tpu.memory_space<smem>>
    %25 = vector.broadcast %24 : f32 to vector<1x8xf32>
    %26 = arith.mulf %1, %25 : vector<1x8xf32>
    %27 = arith.addf %23, %26 : vector<1x8xf32>
    %c1_17 = arith.constant 1 : index
    %c2_18 = arith.constant 2 : index
    %28 = memref.load %arg0[%c1_17, %c2_18] : memref<3x3xf32, #tpu.memory_space<smem>>
    %29 = vector.broadcast %28 : f32 to vector<1x8xf32>
    %30 = arith.mulf %2, %29 : vector<1x8xf32>
    %31 = arith.addf %27, %30 : vector<1x8xf32>
    %c1_19 = arith.constant 1 : index
    %c0_20 = arith.constant 0 : index
    %32 = vector.load %arg3[%c1_19, %c0_20] : memref<3x8xf32, #tpu.memory_space<vmem>>, vector<1x8xf32>
    tpu.vector_store %arg3[%c1_19, %c0_20], %31 {strides = array<i32>} : memref<3x8xf32, #tpu.memory_space<vmem>>, vector<1x8xf32>,
    %c2_21 = arith.constant 2 : index
    %c0_22 = arith.constant 0 : index
    %33 = memref.load %arg0[%c2_21, %c0_22] : memref<3x3xf32, #tpu.memory_space<smem>>
    %34 = vector.broadcast %33 : f32 to vector<1x8xf32>
    %35 = arith.mulf %0, %34 : vector<1x8xf32>
    %c2_23 = arith.constant 2 : index
    %36 = memref.load %arg1[%c2_23] : memref<3xf32, #tpu.memory_space<smem>>
    %37 = vector.broadcast %36 : f32 to vector<1x8xf32>
    %38 = arith.addf %35, %37 : vector<1x8xf32>
    %c2_24 = arith.constant 2 : index
    %c1_25 = arith.constant 1 : index
    %39 = memref.load %arg0[%c2_24, %c1_25] : memref<3x3xf32, #tpu.memory_space<smem>>
    %40 = vector.broadcast %39 : f32 to vector<1x8xf32>
    %41 = arith.mulf %1, %40 : vector<1x8xf32>
    %42 = arith.addf %38, %41 : vector<1x8xf32>
    %c2_26 = arith.constant 2 : index
    %c2_27 = arith.constant 2 : index
    %43 = memref.load %arg0[%c2_26, %c2_27] : memref<3x3xf32, #tpu.memory_space<smem>>
    %44 = vector.broadcast %43 : f32 to vector<1x8xf32>
    %45 = arith.mulf %2, %44 : vector<1x8xf32>
    %46 = arith.addf %42, %45 : vector<1x8xf32>
    %c2_28 = arith.constant 2 : index
    %c0_29 = arith.constant 0 : index
    %47 = vector.load %arg3[%c2_28, %c0_29] : memref<3x8xf32, #tpu.memory_space<vmem>>, vector<1x8xf32>
    tpu.vector_store %arg3[%c2_28, %c0_29], %46 {strides = array<i32>} : memref<3x8xf32, #tpu.memory_space<vmem>>, vector<1x8xf32>,
    return
  }
}

</mosaic_0001>

<bundles_post_ra>
// kernel: tpu_custom_call.1
= control target key start
LH: loop header
LB: loop body
LE: loop exit
PB: predicated region body
PF: predicated region fallthrough
CT: control target
= control target key end

     0   :  { %8 = vsyncpa [#allocation4], 0  ;;  %s225_s0 = inlined_call_operand.hbm [shape: f32[3,3], index: 0, kind: input, shape index: {}]   ;;  %s226_s1 = inlined_call_operand.vmem [shape: f32[3], index: 1, kind: input, shape index: {}]   ;;  %s227_s2 = inlined_call_operand.vmem [shape: f32[3,8], index: 2, kind: input, shape index: {}]   ;;  %s228_s3 = inlined_call_operand.hbm [shape: f32[3,8], index: 3, kind: output, shape index: {}]  }
   0x1   :  { %9 = vsyncpa [#allocation5], 0 }
   0x2   :  { %10 = vsyncpa [#allocation3], 0  ;;  %s25_s14 = sshll.u32 %s226_s1, 4  ;;  %s116_s17 = scalar_lea.hbm %s225_s0, 64  ;;  %s26_s14 = int_to_ptr.vmem [resolvable:$true] %s25_s14 }
   0x3   :  { %p117_p0 = scmp.ne.s32.totalorder %s225_s0, %s116_s17  ;;  %p120_p1 = scmp.lt.u32.totalorder %s116_s17, %s225_s0 }
   0x5   :  { %p122_p2 = pnand %p120_p1, %p117_p0 }
   0x7   :  { %125 = shalt.err (!%p122_p2)
}
   0x8   :  { %s166_s22 = smov [#allocation2]   ;;  %s126_s1 = scalar_lea.vmem %s26_s14, 16 }
   0x9   :  { %18 = dma.hbm_to_smem %s225_s0, 64, %s166_s22, [#allocation4]  }
   0xa   :  { %p127_p3 = scmp.ne.s32.totalorder %s26_s14, %s126_s1  ;;  %p131_p4 = scmp.lt.s32.totalorder %s26_s14, %s26_s14 }
   0xb   :  { %p132_p5 = scmp.lt.s32.totalorder %s126_s1, %s126_s1 }
   0xd   :  { %p133_p6 = por %p132_p5, %p131_p4 }
   0xf   :  { %p134_p7 = pnand %p133_p6, %p127_p3 }
  0x11   :  { %137 = shalt.err (!%p134_p7)
}
  0x12   :  { %s167_s25 = smov [#allocation6]  }
  0x13   :  { %28 = dma.vmem_to_smem %s26_s14, 16, %s167_s25, [#allocation5]  }
  0x14   :  { %160 = dma.done.wait [#allocation4], 64  }
  0x15   :  { %161 = vsyncadd [#allocation4], 4294967232 }
  0x16   :  { %162 = dma.done.wait [#allocation5], 16  }
  0x17   :  { %163 = vsyncadd [#allocation5], 4294967280 }
  0x18   :  { %37 = sfence }
  0x19   :  { %s41_s26 = sld [smem:[#allocation2]]  ;;  %s103_s28 = sld [smem:[#allocation2 + $0x1]]  ;;  %v38_v0 = vld [vmem:[%s227_s2] sm:$0x1]  ;;  %v39_v1 = vld [vmem:[%s227_s2 + $0x1] sm:$0x1] }
  0x1a   :  { %s44_s27 = sld [smem:[#allocation6]]  ;;  %s104_s29 = sld [smem:[#allocation2 + $0x2]]  ;;  %v40_v2 = vld [vmem:[%s227_s2 + $0x2] sm:$0x1]  ;;  %vm55_vm0 = vcmask 57344  }
  0x1b   :  { %s105_s0 = sld [smem:[#allocation2 + $0x80]]  ;;  %s106_s30 = sld [smem:[#allocation6 + $0x1]] }
  0x1c   :  { %s107_s6 = sld [smem:[#allocation2 + $0x81]]  ;;  %s108_s7 = sld [smem:[#allocation2 + $0x82]] }
  0x1d   :  { %s109_s10 = sld [smem:[#allocation2 + $0x100]]  ;;  %s110_s11 = sld [smem:[#allocation6 + $0x2]] }
  0x1e   :  { %s111_s14 = sld [smem:[#allocation2 + $0x101]]  ;;  %s112_s15 = sld [smem:[#allocation2 + $0x102]] }
  0x1f   :  { %v42_v3 = vstv %s41_s26  ;;  %v48_v6 = vstv %s103_s28  ;;  %s168_s2 = smov [#allocation7]  }
  0x20   :  { %v45_v4 = vstv %s44_s27  ;;  %v43_v5 = vmul.f32 %v42_v3, %v38_v0  ;;  %v52_v7 = vstv %s104_s29  ;;  %v49_v8 = vmul.f32 %v48_v6, %v39_v1  ;;  %s93_s16 = sshll.u32 %s168_s2, 4  ;;  %s94_s16 = int_to_ptr.vmem [resolvable:$true] %s93_s16 }
  0x21   :  { %v53_v9 = vmul.f32 %v52_v7, %v40_v2  ;;  %v58_v10 = vstv %s105_s0  ;;  %v61_v11 = vstv %s106_s30  ;;  %s138_s17 = scalar_lea.vmem %s94_s16, 64  ;;  %p143_p9 = scmp.lt.s32.totalorder %s94_s16, %s94_s16 }
  0x22   :  { %v46_v12 = vadd.f32 %v45_v4, %v43_v5  ;;  %v59_v13 = vmul.f32 %v58_v10, %v38_v0  ;;  %v64_v14 = vstv %s107_s6  ;;  %v68_v15 = vstv %s108_s7  ;;  %p139_p8 = scmp.ne.s32.totalorder %s94_s16, %s138_s17  ;;  %p144_p10 = scmp.lt.s32.totalorder %s138_s17, %s138_s17 }
  0x23   :  { %v65_v16 = vmul.f32 %v64_v14, %v39_v1  ;;  %v69_v17 = vmul.f32 %v68_v15, %v40_v2  ;;  %v73_v18 = vstv %s109_s10  ;;  %v76_v19 = vstv %s110_s11 }
  0x24   :  { %v50_v20 = vadd.f32 %v49_v8, %v46_v12  ;;  %v62_v21 = vadd.f32 %v61_v11, %v59_v13  ;;  %v74_v22 = vmul.f32 %v73_v18, %v38_v0  ;;  %v79_v23 = vstv %s111_s14  ;;  %p145_p11 = por %p144_p10, %p143_p9 }
  0x25   :  { %v80_v24 = vmul.f32 %v79_v23, %v39_v1  ;;  %v83_v25 = vstv %s112_s15 }
  0x26   :  { %v54_v26 = vadd.f32 %v53_v9, %v50_v20  ;;  %v66_v27 = vadd.f32 %v65_v16, %v62_v21  ;;  %v77_v28 = vadd.f32 %v76_v19, %v74_v22  ;;  %v84_v29 = vmul.f32 %v83_v25, %v40_v2  ;;  %p146_p12 = pnand %p145_p11, %p139_p8 }
  0x28   :  { %56 = vst.msk [vmem:[#allocation7] sm:$0x1] %vm55_vm0, %v54_v26  ;;  %v70_v30 = vadd.f32 %v69_v17, %v66_v27  ;;  %v81_v31 = vadd.f32 %v80_v24, %v77_v28 }
  0x2a   :  { %71 = vst.msk [vmem:[#allocation7 + $0x1] sm:$0x1] %vm55_vm0, %v70_v30  ;;  %v85_v32 = vadd.f32 %v84_v29, %v81_v31 }
  0x2c   :  { %86 = vst.msk [vmem:[#allocation7 + $0x2] sm:$0x1] %vm55_vm0, %v85_v32 }
  0x2d   :  { %149 = shalt.err (!%p146_p12)
}
  0x2e   :  { %s150_s20 = scalar_lea.hbm %s228_s3, 64 }
  0x2f   :  { %p151_p13 = scmp.ne.s32.totalorder %s228_s3, %s150_s20  ;;  %p154_p0 = scmp.lt.u32.totalorder %s150_s20, %s228_s3 }
  0x31   :  { %p156_p1 = pnand %p154_p0, %p151_p13 }
  0x33   :  { %159 = shalt.err (!%p156_p1)
}
  0x34   :  { %96 = dma.vmem_to_hbm [thread:$0]  %s94_s16, 64, %s228_s3, [#allocation3]  }
  0x35   :  { %164 = dma.done.wait [#allocation3], 64  }
  0x36   :  { %165 = vsyncadd [#allocation3], 4294967232 }
  0x37   :  { %100 = vsyncpa [#allocation3], 1 }
  0x38   :  { %101 = vsyncpa [#allocation4], 1 }
  0x39   :  { %102 = vsyncpa [#allocation5], 1 }

</bundles_post_ra>
